<compile_context>
chip_gen: v7x
topology: tpu7x:2x2x1
jax: 0.10.0
libtpu: 0.0.40
codegen_flags: <defaults>
</compile_context>

<pallas_src>
import jax
import jax.numpy as jnp
from jax.experimental import pallas as pl
from jax.experimental.pallas import tpu as pltpu


def memattn_kernel(qa_ref, h_ref, m_ref, w_ref, b_ref, out_ref):
    """One (batch b, word-tile t) grid step, native (K, TN, D) layout.

    qa_ref : (TN, Q)        h_ref : (TN, H)
    m_ref  : (K, TN, D)     = M[b, :, t*TN:(t+1)*TN, :]
    w_ref  : (K, Q*H, D)    resident per-key Linear weights (in, out)
    b_ref  : (K, 1, D)      resident per-key Linear bias
    out_ref: (K, TN, D)
    """
    n_keys, _, _ = m_ref.shape
    q_size = qa_ref.shape[-1]
    h_size = h_ref.shape[-1]

    qa = qa_ref[...].astype(jnp.float32)                 # (TN, Q)
    hh = h_ref[...].astype(jnp.float32)                  # (TN, H)

    sum_e = []    # per-key softmax denominators, (TN, 1)
    norm = []     # per-key L2 norm of the softmax row,   (TN, 1)

    # ---- Pass 1: per-key Linear + row-softmax stats; stage unscaled M*e in
    # out_ref so only (TN, 1) row statistics stay live across the cross-key step.
    for k in range(n_keys):
        wk = w_ref[k].astype(jnp.float32)                # (Q*H, D)
        mk = m_ref[k].astype(jnp.float32)                # (TN, D)

        # lin = S @ W_k + b_k, without materializing S = outer(qa, h):
        #   lin = b_k + sum_q qa[:, q] * (h @ W_k[q*H:(q+1)*H, :])
        lin = b_ref[k].astype(jnp.float32)               # (1, D) -> broadcasts
        for q in range(q_size):
            wq = wk[q * h_size:(q + 1) * h_size, :]      # (H, D) static slice
            lin = lin + qa[:, q:q + 1] * jnp.dot(
                hh, wq, preferred_element_type=jnp.float32)

        a_k = mk * lin                                   # (TN, D)
        amax = jnp.max(a_k, axis=-1, keepdims=True)
        e = jnp.exp(a_k - amax)                          # EUP
        se = jnp.sum(e, axis=-1, keepdims=True)          # (TN, 1)
        se2 = jnp.sum(e * e, axis=-1, keepdims=True)     # (TN, 1)

        out_ref[k] = (mk * e).astype(out_ref.dtype)      # unscaled staging (VMEM)
        sum_e.append(se)
        # ||softmax(a_k)||_2 = sqrt(sum e^2) / sum e    (exact: (TN,1) is cheap)
        norm.append(jnp.sqrt(se2) / se)

    # ---- Cross-key softmax over the K per-row scores.
    smax = norm[0]
    for k in range(1, n_keys):
        smax = jnp.maximum(smax, norm[k])
    exps = [jnp.exp(nk - smax) for nk in norm]
    denom = exps[0]
    for k in range(1, n_keys):
        denom = denom + exps[k]

    # ---- Pass 2: fold the softmax normalization and the cross-key coefficient
    # into one exact (TN, 1) per-row scale:  out_k = (M_k * e_k) * coeff_k / sum_e_k.
    for k in range(n_keys):
        rowscale = exps[k] / (denom * sum_e[k])          # (TN, 1), exact
        out_ref[k] = (out_ref[k] * rowscale).astype(out_ref.dtype)


def memory_attention(qa, h, M, W, bias, *, block_n=None):
    B, N, Q = qa.shape
    H = h.shape[-1]
    Bm, K, Nm, D = M.shape
    QH = Q * H
    assert (Bm, Nm) == (B, N)
    assert W.shape == (K, QH, D) and bias.shape == (K, D)

    out_dtype = M.dtype

    if block_n is None:
        itemsize = jnp.dtype(M.dtype).itemsize
        row_bytes = 2 * K * D * itemsize                  # M-tile + out-tile per word
        cap = max(8, (1 << 20) // max(row_bytes, 1))      # ~1 MiB of M+out per step
        # Keep >= ~8 grid steps on large problems (pipeline depth / v7x's 2 TCs),
        # but never shrink the word tile below 128.
        if B * ((N + cap - 1) // cap) < 8 and N >= 8 * 128:
            cap = max(128, (B * N) // 8)
        if N <= cap:
            block_n = N
        else:
            bn = (min(cap, N) // 8) * 8
            while bn > 8 and N % bn:
                bn -= 8
            block_n = bn if (bn >= 8 and N % bn == 0) else N
    assert N % block_n == 0 and (block_n % 8 == 0 or block_n == N)

    bias3 = bias.reshape(K, 1, D)                         # metadata-only reshape

    out_bytes = B * K * N * D * jnp.dtype(out_dtype).itemsize
    bytes_accessed = int(
        qa.size * qa.dtype.itemsize + h.size * h.dtype.itemsize
        + M.size * M.dtype.itemsize + W.size * W.dtype.itemsize
        + bias.size * bias.dtype.itemsize + out_bytes)
    flops = int(2 * B * N * K * QH * D + 12 * B * N * K * D)
    transcendentals = int(B * N * K * (D + 2))

    return pl.pallas_call(
        memattn_kernel,
        out_shape=jax.ShapeDtypeStruct((B, K, N, D), out_dtype),
        grid_spec=pltpu.PrefetchScalarGridSpec(
            num_scalar_prefetch=0,
            grid=(B, N // block_n),
            in_specs=[
                pl.BlockSpec((None, block_n, Q), lambda b, t: (b, t, 0)),
                pl.BlockSpec((None, block_n, H), lambda b, t: (b, t, 0)),
                # M in its NATIVE (B, K, N, D) layout — no wrapper transpose.
                pl.BlockSpec((None, K, block_n, D), lambda b, t: (b, 0, t, 0)),
                # Resident parameters (constant index_map -> fetched once).
                pl.BlockSpec((K, QH, D), lambda b, t: (0, 0, 0)),
                pl.BlockSpec((K, 1, D), lambda b, t: (0, 0, 0)),
            ],
            # Output written directly in (B, K, N, D) — no wrapper transpose.
            out_specs=pl.BlockSpec((None, K, block_n, D), lambda b, t: (b, 0, t, 0)),
        ),
        compiler_params=pltpu.CompilerParams(
            dimension_semantics=("parallel", "parallel"),
            # Ample for ~1-2 MiB double-buffered tiles + resident params, and
            # safely inside v7x's 64 MiB physical VMEM (v5e/v6e have 128 MiB).
            vmem_limit_bytes=48 * 1024 * 1024,
        ),
        cost_estimate=pl.CostEstimate(
            flops=flops,
            transcendentals=transcendentals,
            bytes_accessed=bytes_accessed,
        ),
    )(qa, h, M, W, bias3)


def reference(qa, h, M, W, bias):
    """Pure-JAX mirror of the PyTorch forward (for verification)."""
    B, N, Q = qa.shape
    H = h.shape[-1]
    S = (qa[:, :, :, None] * h[:, :, None, :]).reshape(B, N, Q * H)
    lin = jnp.einsum('bns,ksd->bknd', S, W,
                     precision=jax.lax.Precision.HIGHEST) + bias[None, :, None, :]
    a = M * lin
    a = jax.nn.softmax(a, axis=-1)                        # softmax over dim_words
    sc = jnp.sqrt(jnp.sum(a * a, axis=-1))                # torch.norm over dim_words
    score = jax.nn.softmax(sc, axis=1)                    # softmax over keys
    a = a * score[..., None]
    return M * a


if __name__ == "__main__":
    B, K, N, Q, H, D = 2, 3, 16, 4, 8, 16

    key = jax.random.PRNGKey(0)
    k1, k2, k3, k4, k5 = jax.random.split(key, 5)
    qa = jax.random.normal(k1, (B, N, Q), jnp.float32)
    hh = jax.random.normal(k2, (B, N, H), jnp.float32)
    M = jax.random.normal(k3, (B, K, N, D), jnp.float32)
    # deterministic synthetic Linear params (weight stored as (in, out))
    W = 0.1 * jax.random.normal(k4, (K, Q * H, D), jnp.float32)
    bias = 0.1 * jax.random.normal(k5, (K, D), jnp.float32)

    # --- f32 storage: tight correctness check (exact reciprocals in-kernel). ---
    out = jax.block_until_ready(memory_attention(qa, hh, M, W, bias))
    ref = reference(qa, hh, M, W, bias)
    assert out.shape == (B, K, N, D) and out.dtype == jnp.float32
    assert jnp.allclose(out, ref, atol=2e-3, rtol=2e-3), \
        float(jnp.max(jnp.abs(out - ref)))

    # --- bf16 storage of M / W / bias / out (v6e & v7x recommendation): halves
    # HBM bytes of the dominant tensors; compute stays f32 inside the kernel. ---
    M16, W16, b16 = (x.astype(jnp.bfloat16) for x in (M, W, bias))
    out16 = jax.block_until_ready(memory_attention(qa, hh, M16, W16, b16))
    ref16 = reference(qa, hh, M16.astype(jnp.float32), W16.astype(jnp.float32),
                      b16.astype(jnp.float32))
    assert out16.shape == (B, K, N, D) and out16.dtype == jnp.bfloat16
    assert jnp.allclose(out16.astype(jnp.float32), ref16, atol=3e-2, rtol=3e-2), \
        float(jnp.max(jnp.abs(out16.astype(jnp.float32) - ref16)))

    print("KERNEL_OK")
</pallas_src>

<mosaic_0001>
module attributes {stable_mosaic.version = 11 : i64} {
  func.func @memattn_kernel(%arg0: i32, %arg1: i32, %arg2: memref<1x16x4xf32, #tpu.memory_space<vmem>>, %arg3: memref<1x16x8xf32, #tpu.memory_space<vmem>>, %arg4: memref<1x3x16x16xf32, #tpu.memory_space<vmem>>, %arg5: memref<3x32x16xf32, #tpu.memory_space<vmem>>, %arg6: memref<3x1x16xf32, #tpu.memory_space<vmem>>, %arg7: memref<1x3x16x16xf32, #tpu.memory_space<vmem>>) attributes {dimension_semantics = [#tpu.dimension_semantics<parallel>, #tpu.dimension_semantics<parallel>], iteration_bounds = array<i64: 2, 1>, scalar_prefetch = 0 : i64, scratch_operands = 0 : i64, tpu.core_type = #tpu.core_type<tc>, window_params = [{transform_indices = @transform_0, window_bounds = array<i64: 1, 16, 4>}, {transform_indices = @transform_1, window_bounds = array<i64: 1, 16, 8>}, {transform_indices = @transform_2, window_bounds = array<i64: 1, 3, 16, 16>}, {pipeline_mode = #tpu.pipeline_mode<synchronous>, transform_indices = @transform_3, window_bounds = array<i64: 3, 32, 16>}, {pipeline_mode = #tpu.pipeline_mode<synchronous>, transform_indices = @transform_4, window_bounds = array<i64: 3, 1, 16>}, {transform_indices = @transform_5, window_bounds = array<i64: 1, 3, 16, 16>}]} {
    %c0 = arith.constant 0 : index
    %c0_0 = arith.constant 0 : index
    %c0_1 = arith.constant 0 : index
    %0 = vector.load %arg2[%c0, %c0_0, %c0_1] : memref<1x16x4xf32, #tpu.memory_space<vmem>>, vector<1x16x4xf32>
    %1 = vector.shape_cast %0 : vector<1x16x4xf32> to vector<16x4xf32>
    %c0_2 = arith.constant 0 : index
    %c0_3 = arith.constant 0 : index
    %c0_4 = arith.constant 0 : index
    %2 = vector.load %arg3[%c0_2, %c0_3, %c0_4] : memref<1x16x8xf32, #tpu.memory_space<vmem>>, vector<1x16x8xf32>
    %3 = vector.shape_cast %2 : vector<1x16x8xf32> to vector<16x8xf32>
    %c0_5 = arith.constant 0 : index
    %c0_6 = arith.constant 0 : index
    %c0_7 = arith.constant 0 : index
    %4 = vector.load %arg5[%c0_5, %c0_6, %c0_7] : memref<3x32x16xf32, #tpu.memory_space<vmem>>, vector<1x32x16xf32>
    %5 = vector.shape_cast %4 : vector<1x32x16xf32> to vector<32x16xf32>
    %c0_8 = arith.constant 0 : index
    %c0_9 = arith.constant 0 : index
    %c0_10 = arith.constant 0 : index
    %c0_11 = arith.constant 0 : index
    %6 = vector.load %arg4[%c0_8, %c0_9, %c0_10, %c0_11] : memref<1x3x16x16xf32, #tpu.memory_space<vmem>>, vector<1x1x16x16xf32>
    %7 = vector.shape_cast %6 : vector<1x1x16x16xf32> to vector<16x16xf32>
    %c0_12 = arith.constant 0 : index
    %c0_13 = arith.constant 0 : index
    %c0_14 = arith.constant 0 : index
    %8 = vector.load %arg6[%c0_12, %c0_13, %c0_14] : memref<3x1x16xf32, #tpu.memory_space<vmem>>, vector<1x1x16xf32>
    %9 = vector.shape_cast %8 : vector<1x1x16xf32> to vector<1x16xf32>
    %10 = vector.extract_strided_slice %5 {offsets = [0, 0], sizes = [8, 16], strides = [1, 1]} : vector<32x16xf32> to vector<8x16xf32>
    %11 = vector.extract_strided_slice %1 {offsets = [0, 0], sizes = [16, 1], strides = [1, 1]} : vector<16x4xf32> to vector<16x1xf32>
    %cst = arith.constant dense<0.000000e+00> : vector<16x16xf32>
    %12 = tpu.matmul %3, %10, %cst {dimension_numbers = #tpu.dot_dimension_numbers<[1], [0], [0], [1], [0, 0, 1, 1], [], []>} : vector<16x8xf32>, vector<8x16xf32>, vector<16x16xf32> -> vector<16x16xf32>
    %13 = vector.broadcast %11 : vector<16x1xf32> to vector<16x16xf32>
    %14 = arith.mulf %13, %12 : vector<16x16xf32>
    %15 = vector.broadcast %9 : vector<1x16xf32> to vector<16x16xf32>
    %16 = arith.addf %15, %14 : vector<16x16xf32>
    %17 = vector.extract_strided_slice %5 {offsets = [8, 0], sizes = [8, 16], strides = [1, 1]} : vector<32x16xf32> to vector<8x16xf32>
    %18 = vector.extract_strided_slice %1 {offsets = [0, 1], sizes = [16, 1], strides = [1, 1]} : vector<16x4xf32> to vector<16x1xf32>
    %cst_15 = arith.constant dense<0.000000e+00> : vector<16x16xf32>
    %19 = tpu.matmul %3, %17, %cst_15 {dimension_numbers = #tpu.dot_dimension_numbers<[1], [0], [0], [1], [0, 0, 1, 1], [], []>} : vector<16x8xf32>, vector<8x16xf32>, vector<16x16xf32> -> vector<16x16xf32>
    %20 = vector.broadcast %18 : vector<16x1xf32> to vector<16x16xf32>
    %21 = arith.mulf %20, %19 : vector<16x16xf32>
    %22 = arith.addf %16, %21 : vector<16x16xf32>
    %23 = vector.extract_strided_slice %5 {offsets = [16, 0], sizes = [8, 16], strides = [1, 1]} : vector<32x16xf32> to vector<8x16xf32>
    %24 = vector.extract_strided_slice %1 {offsets = [0, 2], sizes = [16, 1], strides = [1, 1]} : vector<16x4xf32> to vector<16x1xf32>
    %cst_16 = arith.constant dense<0.000000e+00> : vector<16x16xf32>
    %25 = tpu.matmul %3, %23, %cst_16 {dimension_numbers = #tpu.dot_dimension_numbers<[1], [0], [0], [1], [0, 0, 1, 1], [], []>} : vector<16x8xf32>, vector<8x16xf32>, vector<16x16xf32> -> vector<16x16xf32>
    %26 = vector.broadcast %24 : vector<16x1xf32> to vector<16x16xf32>
    %27 = arith.mulf %26, %25 : vector<16x16xf32>
    %28 = arith.addf %22, %27 : vector<16x16xf32>
    %29 = vector.extract_strided_slice %5 {offsets = [24, 0], sizes = [8, 16], strides = [1, 1]} : vector<32x16xf32> to vector<8x16xf32>
    %30 = vector.extract_strided_slice %1 {offsets = [0, 3], sizes = [16, 1], strides = [1, 1]} : vector<16x4xf32> to vector<16x1xf32>
    %cst_17 = arith.constant dense<0.000000e+00> : vector<16x16xf32>
    %31 = tpu.matmul %3, %29, %cst_17 {dimension_numbers = #tpu.dot_dimension_numbers<[1], [0], [0], [1], [0, 0, 1, 1], [], []>} : vector<16x8xf32>, vector<8x16xf32>, vector<16x16xf32> -> vector<16x16xf32>
    %32 = vector.broadcast %30 : vector<16x1xf32> to vector<16x16xf32>
    %33 = arith.mulf %32, %31 : vector<16x16xf32>
    %34 = arith.addf %28, %33 : vector<16x16xf32>
    %35 = arith.mulf %7, %34 : vector<16x16xf32>
    %cst_18 = arith.constant dense<0xFF800000> : vector<16xf32>
    %36 = vector.multi_reduction <maximumf>, %35, %cst_18 [1] : vector<16x16xf32> to vector<16xf32>
    %37 = vector.shape_cast %36 : vector<16xf32> to vector<16x1xf32>
    %38 = vector.broadcast %37 : vector<16x1xf32> to vector<16x16xf32>
    %39 = arith.subf %35, %38 : vector<16x16xf32>
    %40 = math.exp %39 : vector<16x16xf32>
    %cst_19 = arith.constant dense<0.000000e+00> : vector<16xf32>
    %41 = vector.multi_reduction <add>, %40, %cst_19 [1] : vector<16x16xf32> to vector<16xf32>
    %42 = vector.shape_cast %41 : vector<16xf32> to vector<16x1xf32>
    %43 = arith.mulf %40, %40 : vector<16x16xf32>
    %cst_20 = arith.constant dense<0.000000e+00> : vector<16xf32>
    %44 = vector.multi_reduction <add>, %43, %cst_20 [1] : vector<16x16xf32> to vector<16xf32>
    %45 = vector.shape_cast %44 : vector<16xf32> to vector<16x1xf32>
    %46 = arith.mulf %7, %40 : vector<16x16xf32>
    %c0_21 = arith.constant 0 : index
    %c0_22 = arith.constant 0 : index
    %c0_23 = arith.constant 0 : index
    %c0_24 = arith.constant 0 : index
    %47 = vector.load %arg7[%c0_21, %c0_22, %c0_23, %c0_24] : memref<1x3x16x16xf32, #tpu.memory_space<vmem>>, vector<1x1x16x16xf32>
    %48 = vector.shape_cast %47 : vector<1x1x16x16xf32> to vector<16x16xf32>
    %49 = vector.shape_cast %46 : vector<16x16xf32> to vector<1x1x16x16xf32>
    tpu.vector_store %arg7[%c0_21, %c0_22, %c0_23, %c0_24], %49 {strides = array<i32>} : memref<1x3x16x16xf32, #tpu.memory_space<vmem>>, vector<1x1x16x16xf32>,
    %50 = math.sqrt %45 : vector<16x1xf32>
    %51 = arith.divf %50, %42 : vector<16x1xf32>
    %c1 = arith.constant 1 : index
    %c0_25 = arith.constant 0 : index
    %c0_26 = arith.constant 0 : index
    %52 = vector.load %arg5[%c1, %c0_25, %c0_26] : memref<3x32x16xf32, #tpu.memory_space<vmem>>, vector<1x32x16xf32>
    %53 = vector.shape_cast %52 : vector<1x32x16xf32> to vector<32x16xf32>
    %c0_27 = arith.constant 0 : index
    %c1_28 = arith.constant 1 : index
    %c0_29 = arith.constant 0 : index
    %c0_30 = arith.constant 0 : index
    %54 = vector.load %arg4[%c0_27, %c1_28, %c0_29, %c0_30] : memref<1x3x16x16xf32, #tpu.memory_space<vmem>>, vector<1x1x16x16xf32>
    %55 = vector.shape_cast %54 : vector<1x1x16x16xf32> to vector<16x16xf32>
    %c1_31 = arith.constant 1 : index
    %c0_32 = arith.constant 0 : index
    %c0_33 = arith.constant 0 : index
    %56 = vector.load %arg6[%c1_31, %c0_32, %c0_33] : memref<3x1x16xf32, #tpu.memory_space<vmem>>, vector<1x1x16xf32>
    %57 = vector.shape_cast %56 : vector<1x1x16xf32> to vector<1x16xf32>
    %58 = vector.extract_strided_slice %53 {offsets = [0, 0], sizes = [8, 16], strides = [1, 1]} : vector<32x16xf32> to vector<8x16xf32>
    %59 = vector.extract_strided_slice %1 {offsets = [0, 0], sizes = [16, 1], strides = [1, 1]} : vector<16x4xf32> to vector<16x1xf32>
    %cst_34 = arith.constant dense<0.000000e+00> : vector<16x16xf32>
    %60 = tpu.matmul %3, %58, %cst_34 {dimension_numbers = #tpu.dot_dimension_numbers<[1], [0], [0], [1], [0, 0, 1, 1], [], []>} : vector<16x8xf32>, vector<8x16xf32>, vector<16x16xf32> -> vector<16x16xf32>
    %61 = vector.broadcast %59 : vector<16x1xf32> to vector<16x16xf32>
    %62 = arith.mulf %61, %60 : vector<16x16xf32>
    %63 = vector.broadcast %57 : vector<1x16xf32> to vector<16x16xf32>
    %64 = arith.addf %63, %62 : vector<16x16xf32>
    %65 = vector.extract_strided_slice %53 {offsets = [8, 0], sizes = [8, 16], strides = [1, 1]} : vector<32x16xf32> to vector<8x16xf32>
    %66 = vector.extract_strided_slice %1 {offsets = [0, 1], sizes = [16, 1], strides = [1, 1]} : vector<16x4xf32> to vector<16x1xf32>
    %cst_35 = arith.constant dense<0.000000e+00> : vector<16x16xf32>
    %67 = tpu.matmul %3, %65, %cst_35 {dimension_numbers = #tpu.dot_dimension_numbers<[1], [0], [0], [1], [0, 0, 1, 1], [], []>} : vector<16x8xf32>, vector<8x16xf32>, vector<16x16xf32> -> vector<16x16xf32>
    %68 = vector.broadcast %66 : vector<16x1xf32> to vector<16x16xf32>
    %69 = arith.mulf %68, %67 : vector<16x16xf32>
    %70 = arith.addf %64, %69 : vector<16x16xf32>
    %71 = vector.extract_strided_slice %53 {offsets = [16, 0], sizes = [8, 16], strides = [1, 1]} : vector<32x16xf32> to vector<8x16xf32>
    %72 = vector.extract_strided_slice %1 {offsets = [0, 2], sizes = [16, 1], strides = [1, 1]} : vector<16x4xf32> to vector<16x1xf32>
    %cst_36 = arith.constant dense<0.000000e+00> : vector<16x16xf32>
    %73 = tpu.matmul %3, %71, %cst_36 {dimension_numbers = #tpu.dot_dimension_numbers<[1], [0], [0], [1], [0, 0, 1, 1], [], []>} : vector<16x8xf32>, vector<8x16xf32>, vector<16x16xf32> -> vector<16x16xf32>
    %74 = vector.broadcast %72 : vector<16x1xf32> to vector<16x16xf32>
    %75 = arith.mulf %74, %73 : vector<16x16xf32>
    %76 = arith.addf %70, %75 : vector<16x16xf32>
    %77 = vector.extract_strided_slice %53 {offsets = [24, 0], sizes = [8, 16], strides = [1, 1]} : vector<32x16xf32> to vector<8x16xf32>
    %78 = vector.extract_strided_slice %1 {offsets = [0, 3], sizes = [16, 1], strides = [1, 1]} : vector<16x4xf32> to vector<16x1xf32>
    %cst_37 = arith.constant dense<0.000000e+00> : vector<16x16xf32>
    %79 = tpu.matmul %3, %77, %cst_37 {dimension_numbers = #tpu.dot_dimension_numbers<[1], [0], [0], [1], [0, 0, 1, 1], [], []>} : vector<16x8xf32>, vector<8x16xf32>, vector<16x16xf32> -> vector<16x16xf32>
    %80 = vector.broadcast %78 : vector<16x1xf32> to vector<16x16xf32>
    %81 = arith.mulf %80, %79 : vector<16x16xf32>
    %82 = arith.addf %76, %81 : vector<16x16xf32>
    %83 = arith.mulf %55, %82 : vector<16x16xf32>
    %cst_38 = arith.constant dense<0xFF800000> : vector<16xf32>
    %84 = vector.multi_reduction <maximumf>, %83, %cst_38 [1] : vector<16x16xf32> to vector<16xf32>
    %85 = vector.shape_cast %84 : vector<16xf32> to vector<16x1xf32>
    %86 = vector.broadcast %85 : vector<16x1xf32> to vector<16x16xf32>
    %87 = arith.subf %83, %86 : vector<16x16xf32>
    %88 = math.exp %87 : vector<16x16xf32>
    %cst_39 = arith.constant dense<0.000000e+00> : vector<16xf32>
    %89 = vector.multi_reduction <add>, %88, %cst_39 [1] : vector<16x16xf32> to vector<16xf32>
    %90 = vector.shape_cast %89 : vector<16xf32> to vector<16x1xf32>
    %91 = arith.mulf %88, %88 : vector<16x16xf32>
    %cst_40 = arith.constant dense<0.000000e+00> : vector<16xf32>
    %92 = vector.multi_reduction <add>, %91, %cst_40 [1] : vector<16x16xf32> to vector<16xf32>
    %93 = vector.shape_cast %92 : vector<16xf32> to vector<16x1xf32>
    %94 = arith.mulf %55, %88 : vector<16x16xf32>
    %c0_41 = arith.constant 0 : index
    %c1_42 = arith.constant 1 : index
    %c0_43 = arith.constant 0 : index
    %c0_44 = arith.constant 0 : index
    %95 = vector.load %arg7[%c0_41, %c1_42, %c0_43, %c0_44] : memref<1x3x16x16xf32, #tpu.memory_space<vmem>>, vector<1x1x16x16xf32>
    %96 = vector.shape_cast %95 : vector<1x1x16x16xf32> to vector<16x16xf32>
    %97 = vector.shape_cast %94 : vector<16x16xf32> to vector<1x1x16x16xf32>
    tpu.vector_store %arg7[%c0_41, %c1_42, %c0_43, %c0_44], %97 {strides = array<i32>} : memref<1x3x16x16xf32, #tpu.memory_space<vmem>>, vector<1x1x16x16xf32>,
    %98 = math.sqrt %93 : vector<16x1xf32>
    %99 = arith.divf %98, %90 : vector<16x1xf32>
    %c2 = arith.constant 2 : index
    %c0_45 = arith.constant 0 : index
    %c0_46 = arith.constant 0 : index
    %100 = vector.load %arg5[%c2, %c0_45, %c0_46] : memref<3x32x16xf32, #tpu.memory_space<vmem>>, vector<1x32x16xf32>
    %101 = vector.shape_cast %100 : vector<1x32x16xf32> to vector<32x16xf32>
    %c0_47 = arith.constant 0 : index
    %c2_48 = arith.constant 2 : index
    %c0_49 = arith.constant 0 : index
    %c0_50 = arith.constant 0 : index
    %102 = vector.load %arg4[%c0_47, %c2_48, %c0_49, %c0_50] : memref<1x3x16x16xf32, #tpu.memory_space<vmem>>, vector<1x1x16x16xf32>
    %103 = vector.shape_cast %102 : vector<1x1x16x16xf32> to vector<16x16xf32>
    %c2_51 = arith.constant 2 : index
    %c0_52 = arith.constant 0 : index
    %c0_53 = arith.constant 0 : index
    %104 = vector.load %arg6[%c2_51, %c0_52, %c0_53] : memref<3x1x16xf32, #tpu.memory_space<vmem>>, vector<1x1x16xf32>
    %105 = vector.shape_cast %104 : vector<1x1x16xf32> to vector<1x16xf32>
    %106 = vector.extract_strided_slice %101 {offsets = [0, 0], sizes = [8, 16], strides = [1, 1]} : vector<32x16xf32> to vector<8x16xf32>
    %107 = vector.extract_strided_slice %1 {offsets = [0, 0], sizes = [16, 1], strides = [1, 1]} : vector<16x4xf32> to vector<16x1xf32>
    %cst_54 = arith.constant dense<0.000000e+00> : vector<16x16xf32>
    %108 = tpu.matmul %3, %106, %cst_54 {dimension_numbers = #tpu.dot_dimension_numbers<[1], [0], [0], [1], [0, 0, 1, 1], [], []>} : vector<16x8xf32>, vector<8x16xf32>, vector<16x16xf32> -> vector<16x16xf32>
    %109 = vector.broadcast %107 : vector<16x1xf32> to vector<16x16xf32>
    %110 = arith.mulf %109, %108 : vector<16x16xf32>
    %111 = vector.broadcast %105 : vector<1x16xf32> to vector<16x16xf32>
    %112 = arith.addf %111, %110 : vector<16x16xf32>
    %113 = vector.extract_strided_slice %101 {offsets = [8, 0], sizes = [8, 16], strides = [1, 1]} : vector<32x16xf32> to vector<8x16xf32>
    %114 = vector.extract_strided_slice %1 {offsets = [0, 1], sizes = [16, 1], strides = [1, 1]} : vector<16x4xf32> to vector<16x1xf32>
    %cst_55 = arith.constant dense<0.000000e+00> : vector<16x16xf32>
    %115 = tpu.matmul %3, %113, %cst_55 {dimension_numbers = #tpu.dot_dimension_numbers<[1], [0], [0], [1], [0, 0, 1, 1], [], []>} : vector<16x8xf32>, vector<8x16xf32>, vector<16x16xf32> -> vector<16x16xf32>
    %116 = vector.broadcast %114 : vector<16x1xf32> to vector<16x16xf32>
    %117 = arith.mulf %116, %115 : vector<16x16xf32>
    %118 = arith.addf %112, %117 : vector<16x16xf32>
    %119 = vector.extract_strided_slice %101 {offsets = [16, 0], sizes = [8, 16], strides = [1, 1]} : vector<32x16xf32> to vector<8x16xf32>
    %120 = vector.extract_strided_slice %1 {offsets = [0, 2], sizes = [16, 1], strides = [1, 1]} : vector<16x4xf32> to vector<16x1xf32>
    %cst_56 = arith.constant dense<0.000000e+00> : vector<16x16xf32>
    %121 = tpu.matmul %3, %119, %cst_56 {dimension_numbers = #tpu.dot_dimension_numbers<[1], [0], [0], [1], [0, 0, 1, 1], [], []>} : vector<16x8xf32>, vector<8x16xf32>, vector<16x16xf32> -> vector<16x16xf32>
    %122 = vector.broadcast %120 : vector<16x1xf32> to vector<16x16xf32>
    %123 = arith.mulf %122, %121 : vector<16x16xf32>
    %124 = arith.addf %118, %123 : vector<16x16xf32>
    %125 = vector.extract_strided_slice %101 {offsets = [24, 0], sizes = [8, 16], strides = [1, 1]} : vector<32x16xf32> to vector<8x16xf32>
    %126 = vector.extract_strided_slice %1 {offsets = [0, 3], sizes = [16, 1], strides = [1, 1]} : vector<16x4xf32> to vector<16x1xf32>
    %cst_57 = arith.constant dense<0.000000e+00> : vector<16x16xf32>
    %127 = tpu.matmul %3, %125, %cst_57 {dimension_numbers = #tpu.dot_dimension_numbers<[1], [0], [0], [1], [0, 0, 1, 1], [], []>} : vector<16x8xf32>, vector<8x16xf32>, vector<16x16xf32> -> vector<16x16xf32>
    %128 = vector.broadcast %126 : vector<16x1xf32> to vector<16x16xf32>
    %129 = arith.mulf %128, %127 : vector<16x16xf32>
    %130 = arith.addf %124, %129 : vector<16x16xf32>
    %131 = arith.mulf %103, %130 : vector<16x16xf32>
    %cst_58 = arith.constant dense<0xFF800000> : vector<16xf32>
    %132 = vector.multi_reduction <maximumf>, %131, %cst_58 [1] : vector<16x16xf32> to vector<16xf32>
    %133 = vector.shape_cast %132 : vector<16xf32> to vector<16x1xf32>
    %134 = vector.broadcast %133 : vector<16x1xf32> to vector<16x16xf32>
    %135 = arith.subf %131, %134 : vector<16x16xf32>
    %136 = math.exp %135 : vector<16x16xf32>
    %cst_59 = arith.constant dense<0.000000e+00> : vector<16xf32>
    %137 = vector.multi_reduction <add>, %136, %cst_59 [1] : vector<16x16xf32> to vector<16xf32>
    %138 = vector.shape_cast %137 : vector<16xf32> to vector<16x1xf32>
    %139 = arith.mulf %136, %136 : vector<16x16xf32>
    %cst_60 = arith.constant dense<0.000000e+00> : vector<16xf32>
    %140 = vector.multi_reduction <add>, %139, %cst_60 [1] : vector<16x16xf32> to vector<16xf32>
    %141 = vector.shape_cast %140 : vector<16xf32> to vector<16x1xf32>
    %142 = arith.mulf %103, %136 : vector<16x16xf32>
    %c0_61 = arith.constant 0 : index
    %c2_62 = arith.constant 2 : index
    %c0_63 = arith.constant 0 : index
    %c0_64 = arith.constant 0 : index
    %143 = vector.load %arg7[%c0_61, %c2_62, %c0_63, %c0_64] : memref<1x3x16x16xf32, #tpu.memory_space<vmem>>, vector<1x1x16x16xf32>
    %144 = vector.shape_cast %143 : vector<1x1x16x16xf32> to vector<16x16xf32>
    %145 = vector.shape_cast %142 : vector<16x16xf32> to vector<1x1x16x16xf32>
    tpu.vector_store %arg7[%c0_61, %c2_62, %c0_63, %c0_64], %145 {strides = array<i32>} : memref<1x3x16x16xf32, #tpu.memory_space<vmem>>, vector<1x1x16x16xf32>,
    %146 = math.sqrt %141 : vector<16x1xf32>
    %147 = arith.divf %146, %138 : vector<16x1xf32>
    %148 = arith.maximumf %51, %99 : vector<16x1xf32>
    %149 = arith.maximumf %148, %147 : vector<16x1xf32>
    %150 = arith.subf %51, %149 : vector<16x1xf32>
    %151 = math.exp %150 : vector<16x1xf32>
    %152 = arith.subf %99, %149 : vector<16x1xf32>
    %153 = math.exp %152 : vector<16x1xf32>
    %154 = arith.subf %147, %149 : vector<16x1xf32>
    %155 = math.exp %154 : vector<16x1xf32>
    %156 = arith.addf %151, %153 : vector<16x1xf32>
    %157 = arith.addf %156, %155 : vector<16x1xf32>
    %158 = arith.mulf %157, %42 : vector<16x1xf32>
    %159 = arith.divf %151, %158 : vector<16x1xf32>
    %c0_65 = arith.constant 0 : index
    %c0_66 = arith.constant 0 : index
    %c0_67 = arith.constant 0 : index
    %c0_68 = arith.constant 0 : index
    %160 = vector.load %arg7[%c0_65, %c0_66, %c0_67, %c0_68] : memref<1x3x16x16xf32, #tpu.memory_space<vmem>>, vector<1x1x16x16xf32>
    %161 = vector.shape_cast %160 : vector<1x1x16x16xf32> to vector<16x16xf32>
    %162 = vector.broadcast %159 : vector<16x1xf32> to vector<16x16xf32>
    %163 = arith.mulf %161, %162 : vector<16x16xf32>
    %c0_69 = arith.constant 0 : index
    %c0_70 = arith.constant 0 : index
    %c0_71 = arith.constant 0 : index
    %c0_72 = arith.constant 0 : index
    %164 = vector.load %arg7[%c0_69, %c0_70, %c0_71, %c0_72] : memref<1x3x16x16xf32, #tpu.memory_space<vmem>>, vector<1x1x16x16xf32>
    %165 = vector.shape_cast %164 : vector<1x1x16x16xf32> to vector<16x16xf32>
    %166 = vector.shape_cast %163 : vector<16x16xf32> to vector<1x1x16x16xf32>
    tpu.vector_store %arg7[%c0_69, %c0_70, %c0_71, %c0_72], %166 {strides = array<i32>} : memref<1x3x16x16xf32, #tpu.memory_space<vmem>>, vector<1x1x16x16xf32>,
    %167 = arith.mulf %157, %90 : vector<16x1xf32>
    %168 = arith.divf %153, %167 : vector<16x1xf32>
    %c0_73 = arith.constant 0 : index
    %c1_74 = arith.constant 1 : index
    %c0_75 = arith.constant 0 : index
    %c0_76 = arith.constant 0 : index
    %169 = vector.load %arg7[%c0_73, %c1_74, %c0_75, %c0_76] : memref<1x3x16x16xf32, #tpu.memory_space<vmem>>, vector<1x1x16x16xf32>
    %170 = vector.shape_cast %169 : vector<1x1x16x16xf32> to vector<16x16xf32>
    %171 = vector.broadcast %168 : vector<16x1xf32> to vector<16x16xf32>
    %172 = arith.mulf %170, %171 : vector<16x16xf32>
    %c0_77 = arith.constant 0 : index
    %c1_78 = arith.constant 1 : index
    %c0_79 = arith.constant 0 : index
    %c0_80 = arith.constant 0 : index
    %173 = vector.load %arg7[%c0_77, %c1_78, %c0_79, %c0_80] : memref<1x3x16x16xf32, #tpu.memory_space<vmem>>, vector<1x1x16x16xf32>
    %174 = vector.shape_cast %173 : vector<1x1x16x16xf32> to vector<16x16xf32>
    %175 = vector.shape_cast %172 : vector<16x16xf32> to vector<1x1x16x16xf32>
    tpu.vector_store %arg7[%c0_77, %c1_78, %c0_79, %c0_80], %175 {strides = array<i32>} : memref<1x3x16x16xf32, #tpu.memory_space<vmem>>, vector<1x1x16x16xf32>,
    %176 = arith.mulf %157, %138 : vector<16x1xf32>
    %177 = arith.divf %155, %176 : vector<16x1xf32>
    %c0_81 = arith.constant 0 : index
    %c2_82 = arith.constant 2 : index
    %c0_83 = arith.constant 0 : index
    %c0_84 = arith.constant 0 : index
    %178 = vector.load %arg7[%c0_81, %c2_82, %c0_83, %c0_84] : memref<1x3x16x16xf32, #tpu.memory_space<vmem>>, vector<1x1x16x16xf32>
    %179 = vector.shape_cast %178 : vector<1x1x16x16xf32> to vector<16x16xf32>
    %180 = vector.broadcast %177 : vector<16x1xf32> to vector<16x16xf32>
    %181 = arith.mulf %179, %180 : vector<16x16xf32>
    %c0_85 = arith.constant 0 : index
    %c2_86 = arith.constant 2 : index
    %c0_87 = arith.constant 0 : index
    %c0_88 = arith.constant 0 : index
    %182 = vector.load %arg7[%c0_85, %c2_86, %c0_87, %c0_88] : memref<1x3x16x16xf32, #tpu.memory_space<vmem>>, vector<1x1x16x16xf32>
    %183 = vector.shape_cast %182 : vector<1x1x16x16xf32> to vector<16x16xf32>
    %184 = vector.shape_cast %181 : vector<16x16xf32> to vector<1x1x16x16xf32>
    tpu.vector_store %arg7[%c0_85, %c2_86, %c0_87, %c0_88], %184 {strides = array<i32>} : memref<1x3x16x16xf32, #tpu.memory_space<vmem>>, vector<1x1x16x16xf32>,
    return
  }
  func.func @transform_0(%arg0: i32, %arg1: i32) -> (i32, i32, i32) {
    %c0_i32 = arith.constant 0 : i32
    %c0_i32_0 = arith.constant 0 : i32
    return %arg0, %arg1, %c0_i32 : i32, i32, i32
  }
  func.func @transform_1(%arg0: i32, %arg1: i32) -> (i32, i32, i32) {
    %c0_i32 = arith.constant 0 : i32
    %c0_i32_0 = arith.constant 0 : i32
    return %arg0, %arg1, %c0_i32 : i32, i32, i32
  }
  func.func @transform_2(%arg0: i32, %arg1: i32) -> (i32, i32, i32, i32) {
    %c0_i32 = arith.constant 0 : i32
    %c0_i32_0 = arith.constant 0 : i32
    %c0_i32_1 = arith.constant 0 : i32
    return %arg0, %c0_i32, %arg1, %c0_i32_0 : i32, i32, i32, i32
  }
  func.func @transform_3(%arg0: i32, %arg1: i32) -> (i32, i32, i32) {
    %c0_i32 = arith.constant 0 : i32
    %c0_i32_0 = arith.constant 0 : i32
    %c0_i32_1 = arith.constant 0 : i32
    %c0_i32_2 = arith.constant 0 : i32
    return %c0_i32, %c0_i32_0, %c0_i32_1 : i32, i32, i32
  }
  func.func @transform_4(%arg0: i32, %arg1: i32) -> (i32, i32, i32) {
    %c0_i32 = arith.constant 0 : i32
    %c0_i32_0 = arith.constant 0 : i32
    %c0_i32_1 = arith.constant 0 : i32
    %c0_i32_2 = arith.constant 0 : i32
    return %c0_i32, %c0_i32_0, %c0_i32_1 : i32, i32, i32
  }
  func.func @transform_5(%arg0: i32, %arg1: i32) -> (i32, i32, i32, i32) {
    %c0_i32 = arith.constant 0 : i32
    %c0_i32_0 = arith.constant 0 : i32
    %c0_i32_1 = arith.constant 0 : i32
    return %arg0, %c0_i32, %arg1, %c0_i32_0 : i32, i32, i32, i32
  }
}

</mosaic_0001>

<bundles_post_ra>
// kernel: tpu_custom_call.1
= control target key start
LH: loop header
LB: loop body
LE: loop exit
PB: predicated region body
PF: predicated region fallthrough
CT: control target
= control target key end

     0   :  { %10 = vsyncpa [#allocation3], 0  ;;  %s2479_s0 = inlined_call_operand.vmem [shape: f32[2,16,4], index: 0, kind: input, shape index: {}]   ;;  %s2480_s1 = inlined_call_operand.vmem [shape: f32[2,16,8], index: 1, kind: input, shape index: {}]   ;;  %s2481_s2 = inlined_call_operand.vmem [shape: f32[2,3,16,16], index: 2, kind: input, shape index: {}]   ;;  %s2482_s3 = inlined_call_operand.vmem [shape: f32[3,32,16], index: 3, kind: input, shape index: {}]   ;;  %s2483_s4 = inlined_call_operand.vmem [shape: f32[3,1,16], index: 4, kind: input, shape index: {}]   ;;  %s2484_s5 = inlined_call_operand.hbm [shape: f32[2,3,16,16], index: 5, kind: output, shape index: {}]  }
   0x1   :  { %12 = vsyncpa [#allocation3 + $0x1], 0  ;;  %s2121_s18 = smov 0   ;;  %s2123_s19 = smov 0  }
   0x2   :  { %s2125_s20 = smov 0   ;;  %s2127_s21 = smov 0  }
   0x3   :  { %s2129_s22 = smov 0   ;;  %s2131_s23 = smov 0  }
   0x4 LB: > { %s1710_s24 = sadd.s32 4294967295, %s2082_s23   ;;  %s1711_s25 = sadd.s32 4294967294, %s2082_s23   ;;  %s2082_s23 = sphi %s2131_s23, %s18_s23   ;;  %s2078_s22 = sphi %s2129_s22, %s2491_s22   ;;  %s2074_s21 = sphi %s2127_s21, %s2490_s21   ;;  %s2070_s20 = sphi %s2125_s20, %s2489_s20   ;;  %s2066_s19 = sphi %s2123_s19, %s2488_s19   ;;  %s2062_s18 = sphi %s2121_s18, %s2487_s18  }
   0x5   : > { %s30_s26 = sadd.s32 1, %s2078_s22  ;;  %s165_s27 = sadd.s32 1, %s2070_s20 }
   0x6   : > { %p32_p0 = scmp.ge.s32.totalorder %s30_s26, 2  ;;  %p175_p1 = scmp.ne.s32.totalorder %s2070_s20, %s2066_s19 }
   0x7   : > { %p176_p2 = scmp.eq.s32.totalorder %s1710_s24, 1  ;;  %p181_p3 = scmp.ne.s32.totalorder %s2066_s19, %s2062_s18 }
   0x8   : > { %s2493_s26 = smov (%p32_p0, %s30_s26), 0  ;;  %p182_p5 = scmp.eq.s32.totalorder %s1711_s25, 1 }
   0x9   : > { %p2161_p4 = por %p176_p2, %p175_p1  ;;  %s160_s29 = ssub.s32 %s2078_s22, %s2493_s26 }
   0xa   : > { %p1714_p6 = scmp.ge.s32.totalorder %s2082_s23, 1  ;;  %p163_p7 = scmp.eq.s32.totalorder %s160_s29, 0 }
   0xb   : > { %p2168_p8 = por %p182_p5, %p181_p3  ;;  %p245_p9 = scmp.lt.s32.totalorder %s2082_s23, 3 }
   0xc   : > { %s2174_s6 = scalar_select %p163_p7, %s2070_s20, %s165_s27  }
   0xd   : > { %p246_p10 = pnand %p1714_p6, %p245_p9 }
   0xe   : > { %v330_v0 = vld [vmem:[%s2482_s3] sm:$0xff] (!%p246_p10)  ;;  %v331_v1 = vld [vmem:[%s2482_s3 + $0x8] sm:$0xff] (!%p246_p10)  ;;  %p296_p11 = scmp.lt.s32.totalorder (!%p246_p10), %s2074_s21, 1  ;;  %v332_v2 = vld [vmem:[%s2482_s3 + $0x10] sm:$0xff] (!%p246_p10)  ;;  %vm337_vm0 = vcmask (!%p246_p10), 64512   ;;  %v2084_v4 = vmov (!%p246_p10), 1  }
   0xf   : > { %249 = sbr.rel (%p246_p10) target bundleno = 647 (0x287), region = 40  ;;  %1814 = vmatprep.subr.mxu0 (!%p246_p10), %v330_v0  ;;  %1819 = vmatprep.subr.mxu1 (!%p246_p10), %v331_v1  ;;  %v333_v3 = vld [vmem:[%s2482_s3 + $0x18] sm:$0xff] (!%p246_p10)  ;;  %v2085_v5 = vmov (!%p246_p10), 0   ;;  %v1729_v8 = vld [vmem:[%s2482_s3 + $0x20] sm:$0xff] (!%p246_p10)  ;;  %v1730_v9 = vld [vmem:[%s2482_s3 + $0x28] sm:$0xff] (!%p246_p10)  ;;  %v2086_v18 = vmov (!%p246_p10), 2  }
  0x10   : > { %1815 = vmatpush3.msra.mxu0 (!%p246_p10), %v330_v0  ;;  %1820 = vmatpush3.msra.mxu1 (!%p246_p10), %v331_v1  ;;  %v1731_v10 = vld [vmem:[%s2482_s3 + $0x30] sm:$0xff] (!%p246_p10)  ;;  %v1732_v11 = vld [vmem:[%s2482_s3 + $0x38] sm:$0xff] (!%p246_p10)  ;;  %v1747_v12 = vld [vmem:[%s2482_s3 + $0x40] sm:$0xff] (!%p246_p10)  ;;  %v2087_v19 = vmov (!%p246_p10), 3   ;;  %vm702_vm1 = vcmask (!%p246_p10), 130048   ;;  %s292_s29 = sand.u32 (!%p246_p10), 1, %s2066_s19  }
  0x11   : > { %1824 = vmatprep.subr.mxu0 (!%p246_p10), %v332_v2  ;;  %1829 = vmatprep.subr.mxu1 (!%p246_p10), %v333_v3  ;;  %v1748_v13 = vld [vmem:[%s2482_s3 + $0x48] sm:$0xff] (!%p246_p10)  ;;  %v1749_v14 = vld [vmem:[%s2482_s3 + $0x50] sm:$0xff] (!%p246_p10)  ;;  %v1750_v15 = vld [vmem:[%s2482_s3 + $0x58] sm:$0xff] (!%p246_p10)  ;;  %s1874_s7 = smul.u32 (!%p246_p10), 48, %s292_s29  ;;  %s2088_s13 = smov (!%p246_p10), [#allocation2]  }
  0x12   : > { %1939 = vset.pattern.permute.xlu1 (!%p246_p10), %v2084_v4  ;;  %1938 = vset.pattern.permute.xlu0 (!%p246_p10), %v2085_v5  ;;  %v1722_v26 = vld [vmem:[%s2483_s4] ss:$0 sm:$0xff] (!%p246_p10)  ;;  %v1738_v51 = vld [vmem:[%s2483_s4 + $0x1] ss:$0 sm:$0xff] (!%p246_p10)  ;;  %s1876_s9 = smul.u32 (!%p246_p10), 768, %s2074_s21 }
  0x13   : > { %s2351_s8 = scalar_lea.vmem (!%p246_p10), [#allocation2], %s1874_s7 }
  0x14   : > { %s2421_s11 = scalar_lea.hbm (!%p246_p10), %s2484_s5, %s1876_s9 }
  0x16   : > { %s2190_s15 = scalar_select %p296_p11, %s2074_s21, 1 }
  0x18   : > { %s1776_s16 = sshll.u32 %s2190_s15, 4  ;;  %s1875_s12 = smul.u32 48, %s2190_s15 }
  0x19   : > { %s313_s25 = scalar_lea.vmem %s2480_s1, %s1776_s16  ;;  %s303_s10 = scalar_lea.vmem %s2479_s0, %s1776_s16 }
  0x1a   : > { %v328_v6 = vld [vmem:[%s313_s25] sm:$0xff]  ;;  %v329_v7 = vld [vmem:[%s313_s25 + $0x8] sm:$0xff]  ;;  %s2280_s14 = scalar_lea.vmem %s2481_s2, %s1875_s12  ;;  %s2433_s12 = scalar_lea.sflag [#allocation3], %s292_s29 }
  0x1b   : > { %1816 = vmatprep.mubr.msk.f32.mxu0 %vm337_vm0, %v328_v6  ;;  %1821 = vmatprep.mubr.msk.f32.mxu1 %vm337_vm0, %v328_v6  ;;  %v326_v16 = vld [vmem:[%s303_s10] sm:$0xff]  ;;  %v327_v17 = vld [vmem:[%s303_s10 + $0x8] sm:$0xff]  ;;  %s1595_s10 = sshll.u32 %s2351_s8, 4  ;;  %s2423_s10 = int_to_ptr.vmem [resolvable:$true] %s1595_s10 }
  0x1c   : > { %1817 = vmatmul.mubr.msk.f32.vlgmr.msra.gmra.mrb[0].mxu0 %vm337_vm0, %v329_v7  ;;  %1822 = vmatmul.mubr.msk.f32.vlgmr.msra.gmra.mrb[0].mxu1 %vm337_vm0, %v329_v7  ;;  %v2288_v54 = vld [vmem:[%s2280_s14 + $0x8] sm:$0xff]  ;;  %v2292_v59 = vld [vmem:[%s2280_s14] sm:$0xff]  ;;  %s2004_s15 = scalar_lea.vmem %s2423_s10, 768 }
  0x1d   : > { %1825 = vmatpush3.msra.mxu0 %v332_v2  ;;  %1830 = vmatpush3.msra.mxu1 %v333_v3  ;;  %p2005_p12 = scmp.ne.s32.totalorder %s2423_s10, %s2004_s15 }
  0x1e   : > { %1826 = vmatprep.mubr.msk.f32.mxu0 %vm337_vm0, %v328_v6  ;;  %1831 = vmatprep.mubr.msk.f32.mxu1 %vm337_vm0, %v328_v6 }
  0x1f   : > { %1834 = vmatprep.subr.mxu0 %v1729_v8  ;;  %1839 = vmatprep.subr.mxu1 %v1730_v9  ;;  %p2006_p13 = pnand %p2005_p12, %p2161_p4 }
  0x20   : > { %1827 = vmatmul.mubr.msk.f32.vlgmr.msra.gmra.mrb[2].mxu0 %vm337_vm0, %v329_v7  ;;  %1832 = vmatmul.mubr.msk.f32.vlgmr.msra.gmra.mrb[2].mxu1 %vm337_vm0, %v329_v7 }
  0x21   : > { %1835 = vmatpush3.msra.mxu0 %v1729_v8  ;;  %1840 = vmatpush3.msra.mxu1 %v1730_v9  ;;  %p2007_p0 = pneg %p2006_p13 }
  0x22   : > { %1836 = vmatprep.mubr.msk.f32.mxu0 %vm337_vm0, %v328_v6  ;;  %1841 = vmatprep.mubr.msk.f32.mxu1 %vm337_vm0, %v328_v6 }
  0x23   : > { %1844 = vmatprep.subr.mxu0 %v1731_v10  ;;  %1849 = vmatprep.subr.mxu1 %v1732_v11 }
  0x24   : > { %1837 = vmatmul.mubr.msk.f32.vlgmr.msra.gmra.mrb[4].mxu0 %vm337_vm0, %v329_v7  ;;  %1842 = vmatmul.mubr.msk.f32.vlgmr.msra.gmra.mrb[4].mxu1 %vm337_vm0, %v329_v7 }
  0x25   : > { %1845 = vmatpush3.msra.mxu0 %v1731_v10  ;;  %1850 = vmatpush3.msra.mxu1 %v1732_v11 }
  0x26   : > { %1846 = vmatprep.mubr.msk.f32.mxu0 %vm337_vm0, %v328_v6  ;;  %1851 = vmatprep.mubr.msk.f32.mxu1 %vm337_vm0, %v328_v6 }
  0x27   : > { %1854 = vmatprep.subr.mxu0 %v1747_v12  ;;  %1859 = vmatprep.subr.mxu1 %v1748_v13 }
  0x28   : > { %1847 = vmatmul.mubr.msk.f32.vlgmr.msra.gmra.mrb[6].mxu0 %vm337_vm0, %v329_v7  ;;  %1852 = vmatmul.mubr.msk.f32.vlgmr.msra.gmra.mrb[6].mxu1 %vm337_vm0, %v329_v7 }
  0x29   : > { %1855 = vmatpush3.msra.mxu0 %v1747_v12  ;;  %1860 = vmatpush3.msra.mxu1 %v1748_v13 }
  0x2a   : > { %1856 = vmatprep.mubr.msk.f32.mxu0 %vm337_vm0, %v328_v6  ;;  %1861 = vmatprep.mubr.msk.f32.mxu1 %vm337_vm0, %v328_v6 }
  0x2b   : > { %1864 = vmatprep.subr.mxu0 %v1749_v14  ;;  %1869 = vmatprep.subr.mxu1 %v1750_v15 }
  0x2c   : > { %1857 = vmatmul.mubr.msk.f32.vlgmr.msra.gmra.mrb[8].mxu0 %vm337_vm0, %v329_v7  ;;  %1862 = vmatmul.mubr.msk.f32.vlgmr.msra.gmra.mrb[8].mxu1 %vm337_vm0, %v329_v7 }
  0x2d   : > { %1865 = vmatpush3.msra.mxu0 %v1749_v14  ;;  %1870 = vmatpush3.msra.mxu1 %v1750_v15 }
  0x2e   : > { %1866 = vmatprep.mubr.msk.f32.mxu0 %vm337_vm0, %v328_v6  ;;  %1871 = vmatprep.mubr.msk.f32.mxu1 %vm337_vm0, %v328_v6 }
  0x2f   : > { %515 = vperm.xlu1 %1939, %v326_v16   ;;  %421 = vperm.xlu0 %1938, %v326_v16  }
  0x30   : > { %1867 = vmatmul.mubr.msk.f32.vlgmr.msra.gmra.mrb[10].mxu0 %vm337_vm0, %v329_v7  ;;  %1872 = vmatmul.mubr.msk.f32.vlgmr.msra.gmra.mrb[10].mxu1 %vm337_vm0, %v329_v7 }
  0x33   : > { %519 = vperm.xlu1 %1939, %v327_v17   ;;  %426 = vperm.xlu0 %1938, %v327_v17  }
  0x37   : > { %1941 = vset.pattern.permute.xlu1 %v2086_v18  ;;  %1940 = vset.pattern.permute.xlu0 %v2086_v18  ;;  %v1756_v18 = vld [vmem:[%s2483_s4 + $0x2] ss:$0 sm:$0xff] }
  0x38   : > { %606 = vperm.xlu1 %1941, %v327_v17   ;;  %602 = vperm.xlu0 %1940, %v326_v16  }
  0x3c   : > { %1942 = vset.pattern.permute.xlu1 %v2087_v19  ;;  %1943 = vset.pattern.permute.xlu0 %v2087_v19 }
  0x3d   : > { %689 = vperm.xlu1 %1942, %v326_v16   ;;  %693 = vperm.xlu0 %1943, %v327_v17  }
  0xae   : > { %v2251_v20 = vpop.permute.xlu0 %421  ;;  %v2253_v21 = vpop.permute.xlu1 %515 }
  0xb2   : > { %v2255_v22 = vpop.permute.xlu0 %426  ;;  %v2257_v23 = vpop.permute.xlu1 %519 }
  0xb7   : > { %v2259_v24 = vpop.permute.xlu0 %602  ;;  %v2261_v25 = vpop.permute.xlu1 %606 }
  0xbc   : > { %v2269_v33 = vpop.permute.xlu0 %693  ;;  %v2272_v36 = vpop.permute.xlu1 %689 }
  0xef   : > { %v1818_v27 = vpop.f32.mrb[0].mxu0  ;;  %v1823_v28 = vpop.f32.mrb[0].mxu1 }
  0xf0   : > { %v430_v29 = vmul.f32 %v1818_v27, %v2255_v22  ;;  %v410_v30 = vpop.f32.mrb[1].mxu0  ;;  %v505_v31 = vpop.f32.mrb[1].mxu1  ;;  %v523_v35 = vmul.f32 %v1823_v28, %v2257_v23  ;;  %v2315_v27 = vld [vmem:[%s2280_s14 + $0x18] sm:$0xff] }
  0xf1   : > { %v429_v32 = vmul.f32 %v2251_v20, %v410_v30  ;;  %v522_v38 = vmul.f32 %v2253_v21, %v505_v31 }
  0xf2   : > { %v438_v34 = vadd.f32 %v1722_v26, %v430_v29 }
  0xf3   : > { %v437_v37 = vadd.f32 %v1722_v26, %v429_v32  ;;  %v1828_v39 = vpop.f32.mrb[2].mxu0  ;;  %v1833_v40 = vpop.f32.mrb[2].mxu1  ;;  %v2319_v32 = vld [vmem:[%s2280_s14 + $0x10] sm:$0xff] }
  0xf4   : > { %v525_v41 = vadd.f32 %v523_v35, %v438_v34  ;;  %v610_v42 = vmul.f32 %v1828_v39, %v2261_v25  ;;  %v592_v43 = vpop.f32.mrb[3].mxu0  ;;  %v679_v44 = vpop.f32.mrb[3].mxu1  ;;  %v697_v45 = vmul.f32 %v1833_v40, %v2269_v33 }
  0xf5   : > { %v524_v46 = vadd.f32 %v522_v38, %v437_v37  ;;  %v609_v47 = vmul.f32 %v2259_v24, %v592_v43  ;;  %v696_v48 = vmul.f32 %v2272_v36, %v679_v44 }
  0xf6   : > { %v612_v49 = vadd.f32 %v610_v42, %v525_v41 }
  0xf7   : > { %v611_v50 = vadd.f32 %v609_v47, %v524_v46  ;;  %v1838_v52 = vpop.f32.mrb[4].mxu0  ;;  %v1843_v53 = vpop.f32.mrb[4].mxu1 }
  0xf8   : > { %v837_v55 = vmul.f32 %v1838_v52, %v2255_v22  ;;  %v827_v56 = vpop.f32.mrb[5].mxu0  ;;  %v912_v57 = vpop.f32.mrb[5].mxu1  ;;  %v699_v58 = vadd.f32 %v697_v45, %v612_v49  ;;  %v922_v63 = vmul.f32 %v1843_v53, %v2257_v23  ;;  %v2333_v53 = vld [vmem:[%s2280_s14 + $0x28] sm:$0xff] }
  0xf9   : > { %v836_v60 = vmul.f32 %v827_v56, %v2251_v20  ;;  %v698_v61 = vadd.f32 %v696_v48, %v611_v50  ;;  %v921_v2 = vmul.f32 %v912_v57, %v2253_v21 }
  0xfa   : > { %v845_v62 = vadd.f32 %v1738_v51, %v837_v55  ;;  %v2297_v0 = vmul.f32 %v699_v58, %v2288_v54  ;;  %v2336_v55 = vld [vmem:[%s2280_s14 + $0x20] sm:$0xff]  ;;  %s2008_s14 = sshll.u32 %s2088_s13, 4  ;;  %s2009_s14 = int_to_ptr.vmem [resolvable:$false] %s2008_s14 }
  0xfb   : > { %v844_v1 = vadd.f32 %v1738_v51, %v836_v60  ;;  %v1848_v3 = vpop.f32.mrb[6].mxu0  ;;  %v1853_v4 = vpop.f32.mrb[6].mxu1  ;;  %v2301_v5 = vmul.f32 %v698_v61, %v2292_v59  ;;  %s2010_s17 = scalar_lea.vmem %s2009_s14, 1536  ;;  %p2011_p1 = scmp.lt.s32.totalorder %s2423_s10, %s2009_s14 }
  0xfc   : > { %v924_v6 = vadd.f32 %v922_v63, %v845_v62  ;;  %v1001_v7 = vmul.f32 %v1848_v3, %v2261_v25  ;;  %v991_v8 = vpop.f32.mrb[7].mxu0  ;;  %v1070_v9 = vpop.f32.mrb[7].mxu1  ;;  %v706_v10 = vsel %vm702_vm1, %v2297_v0, -inf  ;;  %v1080_v15 = vmul.f32 %v1853_v4, %v2269_v33  ;;  %p2012_p2 = scmp.lt.s32.totalorder %s2010_s17, %s2004_s15 }
  0xfd   : > { %v923_v11 = vadd.f32 %v921_v2, %v844_v1  ;;  %v1000_v12 = vmul.f32 %v991_v8, %v2259_v24  ;;  %707 = vmax.xlane.f32.xlu0 %v706_v10  ;;  %v703_v13 = vsel %vm702_vm1, %v2301_v5, -inf  ;;  %v1079_v17 = vmul.f32 %v1070_v9, %v2272_v36 }
  0xfe   : > { %v1003_v14 = vadd.f32 %v1001_v7, %v924_v6  ;;  %704 = vmax.xlane.f32.xlu1 %v703_v13  ;;  %p2013_p3 = por %p2012_p2, %p2011_p1 }
  0xff   : > { %v1002_v16 = vadd.f32 %v1000_v12, %v923_v11  ;;  %v1858_v19 = vpop.f32.mrb[8].mxu0  ;;  %v1863_v26 = vpop.f32.mrb[8].mxu1 }
 0x100   : > { %v1082_v28 = vadd.f32 %v1080_v15, %v1003_v14  ;;  %v1220_v29 = vmul.f32 %v1858_v19, %v2255_v22  ;;  %v1210_v30 = vpop.f32.mrb[9].mxu0  ;;  %v1295_v31 = vpop.f32.mrb[9].mxu1  ;;  %v1305_v38 = vmul.f32 %v1863_v26, %v2257_v23  ;;  %p2014_p5 = pnand %p2013_p3, %p2007_p0 }
 0x101   : > { %v1081_v34 = vadd.f32 %v1079_v17, %v1002_v16  ;;  %v1219_v35 = vmul.f32 %v1210_v30, %v2251_v20  ;;  %v1304_v41 = vmul.f32 %v1295_v31, %v2253_v21 }
 0x102   : > { %v1228_v37 = vadd.f32 %v1756_v18, %v1220_v29  ;;  %v1084_v39 = vmul.f32 %v2315_v27, %v1082_v28 }
 0x103   : > { %v1227_v40 = vadd.f32 %v1756_v18, %v1219_v35  ;;  %v1868_v42 = vpop.f32.mrb[10].mxu0  ;;  %v1873_v43 = vpop.f32.mrb[10].mxu1  ;;  %v1083_v22 = vmul.f32 %v2319_v32, %v1081_v34 }
 0x104   : > { %v1307_v44 = vadd.f32 %v1305_v38, %v1228_v37  ;;  %v1384_v45 = vmul.f32 %v1868_v42, %v2261_v25  ;;  %v1374_v46 = vpop.f32.mrb[11].mxu0  ;;  %v1453_v47 = vpop.f32.mrb[11].mxu1  ;;  %v1088_v20 = vsel %vm702_vm1, %v1084_v39, -inf  ;;  %v1463_v50 = vmul.f32 %v1873_v43, %v2269_v33 }
 0x105   : > { %v1306_v48 = vadd.f32 %v1304_v41, %v1227_v40  ;;  %v1383_v23 = vmul.f32 %v1374_v46, %v2259_v24  ;;  %1089 = vmax.xlane.f32.xlu0 %v1088_v20  ;;  %v1085_v49 = vsel %vm702_vm1, %v1083_v22, -inf  ;;  %v1462_v52 = vmul.f32 %v1453_v47, %v2272_v36 }
 0x106   : > { %v1386_v21 = vadd.f32 %v1384_v45, %v1307_v44  ;;  %1086 = vmax.xlane.f32.xlu1 %v1085_v49 }
 0x107   : > { %v1385_v51 = vadd.f32 %v1383_v23, %v1306_v48 }
 0x108   : > { %v1465_v25 = vadd.f32 %v1463_v50, %v1386_v21 }
 0x109   : > { %v1464_v56 = vadd.f32 %v1462_v52, %v1385_v51 }
 0x10a   : > { %v1467_v57 = vmul.f32 %v2333_v53, %v1465_v25 }
 0x10b   : > { %v1466_v24 = vmul.f32 %v2336_v55, %v1464_v56 }
 0x10c   : > { %v1471_v58 = vsel %vm702_vm1, %v1467_v57, -inf }
 0x10d   : > { %1472 = vmax.xlane.f32.xlu0 %v1471_v58  ;;  %v1468_v33 = vsel %vm702_vm1, %v1466_v24, -inf }
 0x10e   : > { %1469 = vmax.xlane.f32.xlu1 %v1468_v33 }
 0x18a   : > { %v708_v60 = vpop.xlane.xlu0 %707 }
 0x18b   : > { %v710_v36 = vsub.f32 %v2297_v0, %v708_v60  ;;  %v705_v61 = vpop.xlane.xlu1 %704 }
 0x18c   : > { %v709_v62 = vsub.f32 %v2301_v5, %v705_v61 }
 0x18d   : > { %v713_v63 = vmul.f32 1.442695, %v710_v36 }
 0x18e   : > { %v711_v1 = vmul.f32 1.442695, %v709_v62 }
 0x18f   : > { %1944 = vpow2.f32 %v713_v63 }
 0x190   : > { %1946 = vpow2.f32 %v711_v1 }
 0x192   : > { %v1090_v2 = vpop.xlane.xlu0 %1089 }
 0x193   : > { %v1092_v3 = vsub.f32 %v1084_v39, %v1090_v2  ;;  %v1087_v4 = vpop.xlane.xlu1 %1086 }
 0x194   : > { %v1091_v6 = vsub.f32 %v1083_v22, %v1087_v4 }
 0x195   : > { %v1095_v7 = vmul.f32 1.442695, %v1092_v3 }
 0x196   : > { %v1093_v8 = vmul.f32 1.442695, %v1091_v6 }
 0x197   : > { %1948 = vpow2.f32 %v1095_v7 }
 0x198   : > { %1950 = vpow2.f32 %v1093_v8 }
 0x199   : > { %v1945_v9 = vpop.eup %1944 }
 0x19a   : > { %v1947_v0 = vpop.eup %1946  ;;  %v730_v10 = vmul.f32 %v1945_v9, %v2288_v54  ;;  %v1473_v5 = vpop.xlane.xlu0 %1472  ;;  %v718_v11 = vsel %vm702_vm1, %v1945_v9, 0.0  ;;  %v722_v12 = vmul.f32 %v1945_v9, %v1945_v9 }
 0x19b   : > { %v729_v13 = vmul.f32 %v1947_v0, %v2292_v59  ;;  %v1475_v14 = vsub.f32 %v1467_v57, %v1473_v5  ;;  %v1470_v15 = vpop.xlane.xlu1 %1469  ;;  %719 = vadd.xlane.f32.xlu0 %v718_v11  ;;  %v715_v16 = vsel %vm702_vm1, %v1947_v0, 0.0  ;;  %v721_v17 = vmul.f32 %v1947_v0, %v1947_v0 }
 0x19c   : > { %732 = vst.msk [vmem:[%s2351_s8 + $0x8] sm:$0xff] %vm702_vm1, %v730_v10  ;;  %v1474_v18 = vsub.f32 %v1466_v24, %v1470_v15  ;;  %716 = vadd.xlane.f32.xlu1 %v715_v16  ;;  %v726_v59 = vsel %vm702_vm1, %v722_v12, 0.0 }
 0x19d   : > { %731 = vst.msk [vmem:[%s2351_s8] sm:$0xff] %vm702_vm1, %v729_v13  ;;  %v1478_v54 = vmul.f32 1.442695, %v1475_v14  ;;  %v723_v26 = vsel %vm702_vm1, %v721_v17, 0.0 }
 0x19e   : > { %v1476_v19 = vmul.f32 1.442695, %v1474_v18 }
 0x19f   : > { %1952 = vpow2.f32 %v1478_v54  ;;  %727 = vadd.xlane.f32.xlu0 %v726_v59 }
 0x1a0   : > { %1954 = vpow2.f32 %v1476_v19  ;;  %724 = vadd.xlane.f32.xlu1 %v723_v26 }
 0x1a1   : > { %v1949_v28 = vpop.eup %1948 }
 0x1a2   : > { %v1951_v29 = vpop.eup %1950  ;;  %v1112_v30 = vmul.f32 %v1949_v28, %v2315_v27  ;;  %v1100_v31 = vsel %vm702_vm1, %v1949_v28, 0.0  ;;  %v1104_v34 = vmul.f32 %v1949_v28, %v1949_v28 }
 0x1a3   : > { %v1111_v35 = vmul.f32 %v1951_v29, %v2319_v32  ;;  %1101 = vadd.xlane.f32.xlu0 %v1100_v31  ;;  %v1097_v37 = vsel %vm702_vm1, %v1951_v29, 0.0  ;;  %v1103_v38 = vmul.f32 %v1951_v29, %v1951_v29 }
 0x1a4   : > { %1746 = vst.msk [vmem:[%s2351_s8 + $0x18] sm:$0xff] %vm702_vm1, %v1112_v30  ;;  %1098 = vadd.xlane.f32.xlu1 %v1097_v37  ;;  %v1108_v39 = vsel %vm702_vm1, %v1104_v34, 0.0 }
 0x1a5   : > { %1745 = vst.msk [vmem:[%s2351_s8 + $0x10] sm:$0xff] %vm702_vm1, %v1111_v35  ;;  %v1105_v27 = vsel %vm702_vm1, %v1103_v38, 0.0 }
 0x1a7   : > { %1109 = vadd.xlane.f32.xlu0 %v1108_v39 }
 0x1a8   : > { %1106 = vadd.xlane.f32.xlu1 %v1105_v27 }
 0x1a9   : > { %v1953_v40 = vpop.eup %1952 }
 0x1aa   : > { %v1955_v41 = vpop.eup %1954  ;;  %v1495_v32 = vmul.f32 %v1953_v40, %v2333_v53  ;;  %v1487_v42 = vmul.f32 %v1953_v40, %v1953_v40  ;;  %v1483_v46 = vsel %vm702_vm1, %v1953_v40, 0.0 }
 0x1ab   : > { %v1494_v43 = vmul.f32 %v1955_v41, %v2336_v55  ;;  %v1486_v22 = vmul.f32 %v1955_v41, %v1955_v41  ;;  %v1480_v47 = vsel %vm702_vm1, %v1955_v41, 0.0 }
 0x1ac   : > { %1764 = vst.msk [vmem:[%s2351_s8 + $0x28] sm:$0xff] %vm702_vm1, %v1495_v32  ;;  %v1491_v44 = vsel %vm702_vm1, %v1487_v42, 0.0 }
 0x1ad   : > { %1763 = vst.msk [vmem:[%s2351_s8 + $0x20] sm:$0xff] %vm702_vm1, %v1494_v43  ;;  %1492 = vadd.xlane.f32.xlu0 %v1491_v44  ;;  %v1488_v45 = vsel %vm702_vm1, %v1486_v22, 0.0 }
 0x1ae   : > { %1489 = vadd.xlane.f32.xlu1 %v1488_v45 }
 0x1b1   : > { %1484 = vadd.xlane.f32.xlu0 %v1483_v46 }
 0x1b2   : > { %1481 = vadd.xlane.f32.xlu1 %v1480_v47 }
 0x228   : > { %v2379_v20 = vpop.xlane.xlu0 %719 }
 0x229   : > { %v2381_v48 = vpop.xlane.xlu1 %716 }
 0x22c   : > { %v728_v23 = vpop.xlane.xlu0 %727 }
 0x22d   : > { %v725_v49 = vpop.xlane.xlu1 %724  ;;  %1956 = vrsqrt.f32 %v728_v23  ;;  %vm742_vm2 = vcmp.eq.f32.partialorder %v728_v23, inf  ;;  %vm744_vm3 = vcmp.eq.f32.partialorder %v728_v23, 0.0  ;;  %v745_v61 = vand.u32 2147483648, %v728_v23 }
 0x22e   : > { %1958 = vrsqrt.f32 %v725_v49  ;;  %vm735_vm5 = vcmp.eq.f32.partialorder %v725_v49, inf  ;;  %v738_v5 = vand.u32 2147483648, %v725_v49  ;;  %vm737_vm9 = vcmp.eq.f32.partialorder %v725_v49, 0.0 }
 0x230   : > { %v2383_v21 = vpop.xlane.xlu0 %1101 }
 0x231   : > { %v2385_v50 = vpop.xlane.xlu1 %1098 }
 0x234   : > { %v1110_v51 = vpop.xlane.xlu0 %1109 }
 0x235   : > { %1960 = vrsqrt.f32 %v1110_v51  ;;  %v1107_v52 = vpop.xlane.xlu1 %1106  ;;  %vm1125_vm4 = vcmp.eq.f32.partialorder %v1110_v51, inf  ;;  %v1128_v1 = vand.u32 2147483648, %v1110_v51  ;;  %vm1127_vm6 = vcmp.eq.f32.partialorder %v1110_v51, 0.0 }
 0x236   : > { %1962 = vrsqrt.f32 %v1107_v52  ;;  %vm1118_vm7 = vcmp.eq.f32.partialorder %v1107_v52, inf  ;;  %v1121_v9 = vand.u32 2147483648, %v1107_v52  ;;  %vm1120_vm8 = vcmp.eq.f32.partialorder %v1107_v52, 0.0 }
 0x237   : > { %1964 = vrcp.f32 %v2379_v20  ;;  %v1957_v53 = vpop.eup %1956 }
 0x238   : > { %1966 = vrcp.f32 %v2383_v21  ;;  %v1959_v56 = vpop.eup %1958  ;;  %v741_v57 = vmul.f32 %v1957_v53, %v728_v23 }
 0x239   : > { %v734_v33 = vmul.f32 %v1959_v56, %v725_v49 }
 0x23a   : > { %v1493_v25 = vpop.xlane.xlu0 %1492  ;;  %v743_v63 = vsel %vm742_vm2, %v728_v23, %v741_v57 }
 0x23b   : > { %1968 = vrsqrt.f32 %v1493_v25  ;;  %v1490_v55 = vpop.xlane.xlu1 %1489  ;;  %v736_v6 = vsel %vm735_vm5, %v725_v49, %v734_v33  ;;  %v746_v10 = vsel %vm744_vm3, %v745_v61, %v743_v63  ;;  %vm1508_vm10 = vcmp.eq.f32.partialorder %v1493_v25, inf }
 0x23c   : > { %1970 = vrcp.f32 %v2385_v50  ;;  %v739_v14 = vsel %vm737_vm9, %v738_v5, %v736_v6  ;;  %v1511_v54 = vand.u32 2147483648, %v1493_v25  ;;  %vm1510_vm11 = vcmp.eq.f32.partialorder %v1493_v25, 0.0  ;;  %v1766_v5 = vld [vmem:[%s2351_s8 + $0x18] sm:$0xff] }
 0x23d   : > { %1972 = vrsqrt.f32 %v1490_v55  ;;  %vm1501_vm12 = vcmp.eq.f32.partialorder %v1490_v55, inf  ;;  %v1504_v31 = vand.u32 2147483648, %v1490_v55  ;;  %vm1503_vm13 = vcmp.eq.f32.partialorder %v1490_v55, 0.0 }
 0x23e   : > { %1974 = vrcp.f32 %v2381_v48  ;;  %v2391_v24 = vpop.xlane.xlu0 %1484 }
 0x23f   : > { %v1961_v58 = vpop.eup %1960  ;;  %1976 = vrcp.f32 %v2391_v24  ;;  %v2394_v60 = vpop.xlane.xlu1 %1481 }
 0x240   : > { %v1963_v36 = vpop.eup %1962  ;;  %v1124_v62 = vmul.f32 %v1961_v58, %v1110_v51  ;;  %1978 = vrcp.f32 %v2394_v60 }
 0x241   : > { %v1117_v2 = vmul.f32 %v1963_v36, %v1107_v52  ;;  %v1965_v4 = vpop.eup %1964 }
 0x242   : > { %v1126_v3 = vsel %vm1125_vm4, %v1110_v51, %v1124_v62  ;;  %v1967_v0 = vpop.eup %1966  ;;  %v750_v18 = vmul.f32 %v1965_v4, %v746_v10 }
 0x243   : > { %v1129_v7 = vsel %vm1127_vm6, %v1128_v1, %v1126_v3  ;;  %v1119_v8 = vsel %vm1118_vm7, %v1107_v52, %v1117_v2 }
 0x244   : > { %v1122_v12 = vsel %vm1120_vm8, %v1121_v9, %v1119_v8  ;;  %v1133_v15 = vmul.f32 %v1967_v0, %v1129_v7  ;;  %v1550_v0 = vld [vmem:[%s2351_s8 + $0x8] sm:$0xff] }
 0x245   : > { %v1969_v11 = vpop.eup %1968 }
 0x246   : > { %v1971_v13 = vpop.eup %1970  ;;  %v1507_v16 = vmul.f32 %v1969_v11, %v1493_v25  ;;  %v1518_v38 = vmax.f32 %v750_v18, %v1133_v15 }
 0x247   : > { %v1973_v17 = vpop.eup %1972  ;;  %v1131_v59 = vmul.f32 %v1971_v13, %v1122_v12  ;;  %v1770_v13 = vld [vmem:[%s2351_s8 + $0x28] sm:$0xff] }
 0x248   : > { %v1975_v19 = vpop.eup %1974  ;;  %v1509_v26 = vsel %vm1508_vm10, %v1493_v25, %v1507_v16  ;;  %v1500_v28 = vmul.f32 %v1973_v17, %v1490_v55  ;;  %v1549_v17 = vld [vmem:[%s2351_s8] sm:$0xff] }
 0x249   : > { %v1977_v29 = vpop.eup %1976  ;;  %v748_v30 = vmul.f32 %v1975_v19, %v739_v14  ;;  %v1512_v34 = vsel %vm1510_vm11, %v1511_v54, %v1509_v26  ;;  %v1765_v19 = vld [vmem:[%s2351_s8 + $0x10] sm:$0xff] }
 0x24a   : > { %v1979_v35 = vpop.eup %1978  ;;  %v1502_v37 = vsel %vm1501_vm12, %v1490_v55, %v1500_v28  ;;  %v1516_v39 = vmul.f32 %v1977_v29, %v1512_v34  ;;  %v1769_v28 = vld [vmem:[%s2351_s8 + $0x20] sm:$0xff] }
 0x24b   : > { %v1505_v27 = vsel %vm1503_vm13, %v1504_v31, %v1502_v37  ;;  %v1517_v41 = vmax.f32 %v748_v30, %v1131_v59 }
 0x24c   : > { %v1520_v40 = vmax.f32 %v1518_v38, %v1516_v39  ;;  %v1514_v32 = vmul.f32 %v1979_v35, %v1505_v27 }
 0x24e   : > { %v1522_v42 = vsub.f32 %v750_v18, %v1520_v40  ;;  %v1528_v43 = vsub.f32 %v1133_v15, %v1520_v40  ;;  %v1534_v22 = vsub.f32 %v1516_v39, %v1520_v40  ;;  %v1519_v44 = vmax.f32 %v1517_v41, %v1514_v32 }
 0x250   : > { %v1525_v45 = vmul.f32 1.442695, %v1522_v42  ;;  %v1531_v46 = vmul.f32 1.442695, %v1528_v43  ;;  %v1537_v47 = vmul.f32 1.442695, %v1534_v22  ;;  %v1521_v23 = vsub.f32 %v748_v30, %v1519_v44 }
 0x251   : > { %v1527_v49 = vsub.f32 %v1131_v59, %v1519_v44  ;;  %v1533_v51 = vsub.f32 %v1514_v32, %v1519_v44 }
 0x252   : > { %1980 = vpow2.f32 %v1525_v45  ;;  %v1523_v52 = vmul.f32 1.442695, %v1521_v23 }
 0x253   : > { %1982 = vpow2.f32 %v1531_v46  ;;  %v1529_v53 = vmul.f32 1.442695, %v1527_v49  ;;  %v1535_v25 = vmul.f32 1.442695, %v1533_v51 }
 0x254   : > { %1984 = vpow2.f32 %v1537_v47 }
 0x255   : > { %1986 = vpow2.f32 %v1523_v52 }
 0x256   : > { %1988 = vpow2.f32 %v1529_v53 }
 0x257   : > { %1990 = vpow2.f32 %v1535_v25 }
 0x25c   : > { %v1981_v55 = vpop.eup %1980 }
 0x25d   : > { %v1983_v56 = vpop.eup %1982 }
 0x25e   : > { %v1985_v57 = vpop.eup %1984  ;;  %v1540_v58 = vadd.f32 %v1983_v56, %v1981_v55 }
 0x25f   : > { %v1987_v33 = vpop.eup %1986 }
 0x260   : > { %v1989_v36 = vpop.eup %1988  ;;  %v1542_v61 = vadd.f32 %v1985_v57, %v1540_v58 }
 0x261   : > { %v1539_v62 = vadd.f32 %v1989_v36, %v1987_v33  ;;  %v1991_v63 = vpop.eup %1990 }
 0x262   : > { %v1544_v1 = vmul.f32 %v1542_v61, %v2379_v20  ;;  %v1556_v2 = vmul.f32 %v1542_v61, %v2383_v21  ;;  %v1568_v3 = vmul.f32 %v1542_v61, %v2391_v24 }
 0x263   : > { %v1541_v4 = vadd.f32 %v1991_v63, %v1539_v62 }
 0x264   : > { %1992 = vrcp.f32 %v1544_v1 }
 0x265   : > { %1994 = vrcp.f32 %v1556_v2  ;;  %v1543_v6 = vmul.f32 %v1541_v4, %v2381_v48  ;;  %v1555_v7 = vmul.f32 %v1541_v4, %v2385_v50  ;;  %v1567_v8 = vmul.f32 %v1541_v4, %v2394_v60 }
 0x266   : > { %1996 = vrcp.f32 %v1568_v3 }
 0x267   : > { %1998 = vrcp.f32 %v1543_v6 }
 0x268   : > { %2000 = vrcp.f32 %v1555_v7 }
 0x269   : > { %2002 = vrcp.f32 %v1567_v8 }
 0x26e   : > { %v1993_v20 = vpop.eup %1992 }
 0x26f   : > { %v1995_v21 = vpop.eup %1994  ;;  %v1548_v24 = vmul.f32 %v1993_v20, %v1981_v55 }
 0x270   : > { %v1997_v9 = vpop.eup %1996  ;;  %v1560_v10 = vmul.f32 %v1995_v21, %v1983_v56 }
 0x271   : > { %v1999_v48 = vpop.eup %1998  ;;  %v1552_v50 = vmul.f32 %v1550_v0, %v1548_v24  ;;  %v1572_v60 = vmul.f32 %v1997_v9, %v1985_v57 }
 0x272   : > { %v2001_v11 = vpop.eup %2000  ;;  %v1564_v12 = vmul.f32 %v1766_v5, %v1560_v10  ;;  %v1546_v14 = vmul.f32 %v1999_v48, %v1987_v33 }
 0x273   : > { %v2003_v15 = vpop.eup %2002  ;;  %v1576_v16 = vmul.f32 %v1770_v13, %v1572_v60  ;;  %1554 = vst.msk [vmem:[%s2351_s8 + $0x8] sm:$0xff] %vm702_vm1, %v1552_v50  ;;  %v1558_v18 = vmul.f32 %v2001_v11, %v1989_v36 }
 0x274   : > { %1768 = vst.msk [vmem:[%s2351_s8 + $0x18] sm:$0xff] %vm702_vm1, %v1564_v12  ;;  %v1551_v54 = vmul.f32 %v1549_v17, %v1546_v14  ;;  %v1570_v59 = vmul.f32 %v2003_v15, %v1991_v63 }
 0x275   : > { %1772 = vst.msk [vmem:[%s2351_s8 + $0x28] sm:$0xff] %vm702_vm1, %v1576_v16  ;;  %v1563_v26 = vmul.f32 %v1765_v19, %v1558_v18 }
 0x276   : > { %v1575_v29 = vmul.f32 %v1769_v28, %v1570_v59  ;;  %1553 = vst.msk [vmem:[%s2351_s8] sm:$0xff] %vm702_vm1, %v1551_v54 }
 0x277   : > { %1767 = vst.msk [vmem:[%s2351_s8 + $0x10] sm:$0xff] %vm702_vm1, %v1563_v26 }
 0x278   : > { %1771 = vst.msk [vmem:[%s2351_s8 + $0x20] sm:$0xff] %vm702_vm1, %v1575_v29 }
 0x279   : > { %2017 = shalt.err (!%p2014_p5)
}
 0x27a   : > { %s2018_s24 = scalar_lea.hbm %s2421_s11, 768  ;;  %s2022_s29 = scalar_lea.hbm %s2484_s5, 1536 }
 0x27b   : > { %p2019_p6 = scmp.ne.s32.totalorder %s2421_s11, %s2018_s24  ;;  %p2023_p10 = scmp.lt.u32.totalorder %s2421_s11, %s2484_s5 }
 0x27c   : > { %p2024_p11 = scmp.lt.u32.totalorder %s2022_s29, %s2018_s24  ;;  %p2026_p13 = scmp.lt.u32.totalorder %s2018_s24, %s2421_s11 }
 0x27d   : > { %p2020_p7 = pnand %p2019_p6, %p2161_p4 }
 0x27e   : > { %p2025_p12 = por %p2024_p11, %p2023_p10 }
 0x27f   : > { %p2021_p9 = pneg %p2020_p7 }
 0x280   : > { %p2027_p0 = por %p2026_p13, %p2025_p12 }
 0x282   : > { %p2028_p1 = pnand %p2027_p0, %p2021_p9 }
 0x284   : > { %2031 = shalt.err (!%p2028_p1)
}
 0x285   : > { %s2089_s9 = smov 128   ;;  %s2090_s21 = smov 8  }
 0x286   : > { %1877 = dma.vmem_to_hbm [thread:$0]  (%p2161_p4), %s2423_s10, 768, %s2421_s11, %s2433_s12, %s2089_s9, %s2089_s9, %s2090_s21  }
 0x287 PF: > { %p1883_p2 = scmp.ge.s32.totalorder %s2082_s23, 2  ;;  %s1610_s16 = sand.u32 1, %s2062_s18  }
 0x288   : > { %s1611_s15 = scalar_lea.sflag [#allocation3], %s1610_s16 }
 0x289   : > { %p1880_p3 = pnand %p1883_p2, %p2168_p8 }
 0x28b   : > { %2057 = dma.done.wait (!%p1880_p3), %s1611_s15, 768  }
 0x28c   : > { %2059 = vsyncadd (!%p1880_p3), %s1611_s15, 4294966528  ;;  %s18_s23 = sadd.s32 1, %s2082_s23   ;;  %s2487_s18 = smov %s2066_s19 }
 0x28d   : > { %p15_p5 = scmp.ge.s32.totalorder %s18_s23, 4   ;;  %s2488_s19 = smov %s2070_s20 }
 0x28e   : > { %s2489_s20 = smov %s2174_s6  ;;  %s2490_s21 = smov %s2078_s22 }
 0x28f   : > { %s2491_s22 = smov %s2493_s26  ;;  %17 = sbr.rel (!%p15_p5) target bundleno = 4 (0x4), region = 89 }
 0x296   :  { %1616 = vsyncpa [#allocation3], 1 }
 0x297   :  { %1618 = vsyncpa [#allocation3 + $0x1], 1 }

</bundles_post_ra>
